<compile_context>
chip_gen: v7x
topology: tpu7x:2x2x1
jax: 0.10.0
libtpu: 0.0.40
codegen_flags: <defaults>
</compile_context>

<pallas_src>
import functools

import jax
import jax.numpy as jnp
from jax.experimental import pallas as pl
from jax.experimental.pallas import tpu as pltpu


def _rmsnorm_kernel(x_ref, w_ref, o_ref, *, eps, inv_dim):
    # x_ref: (tm, dim) native dtype; w_ref: (1, dim) bf16; o_ref: (tm, dim) bf16.
    xb = x_ref[...].astype(jnp.bfloat16)                 # torch: x.to(bfloat16)
    x = xb.astype(jnp.float32)                           # .float() -> norm math in f32
    ms = jnp.sum(x * x, axis=-1, keepdims=True) * inv_dim  # (tm, 1), const-mul not div
    inv = jax.lax.rsqrt(ms + eps)                        # EUP rsqrt
    normed = (x * inv).astype(jnp.bfloat16)              # .type_as(x) -> bf16
    o_ref[...] = normed * w_ref[...]                     # bf16 * bf16 (as in torch)


def _round_up(a, b):
    return (a + b - 1) // b * b


def _vmem_capacity_bytes():
    try:
        return int(pltpu.get_tpu_info().vmem_capacity_bytes)
    except Exception:
        return 64 * 2**20  # conservative (v7x-sized) fallback


def _choose_tm(T, dim, in_bytes, vmem_cap):
    # Per-token-row VMEM footprint: double-buffered input + output tiles plus
    # ~2 live f32 intermediates inside the kernel body.
    per_row = dim * (2 * in_bytes + 2 * 2 + 2 * 4)
    budget = int(vmem_cap * 0.70)
    tm_cap = max(8, (budget // per_row) // 8 * 8)
    # Big tiles on 128 MiB chips (v5e/v6e); moderate default on 64 MiB v7x.
    tm_target = 1024 if vmem_cap >= 100 * 2**20 else 512
    tm = min(tm_target, tm_cap)
    if T <= 8:
        return T  # single full-extent block (block_shape == array shape)
    if T <= tm:
        # Ensure at least 2 grid steps so both TensorCores (v7x) get work.
        tm = max(8, _round_up(pl.cdiv(T, 2), 8))
    return min(tm, _round_up(T, 8))


@functools.partial(jax.jit, static_argnames=("eps",))
def rms_norm(x, weight, *, eps=1e-6):
    """x: (..., dim) any float dtype; weight: (dim,). Returns (..., dim) bf16."""
    orig_shape = x.shape
    dim = orig_shape[-1]
    weight = weight.astype(jnp.bfloat16)

    xt = x.reshape(-1, dim)                 # [tokens, dim], feature dim lane-dense
    T = xt.shape[0]
    in_bytes = jnp.dtype(x.dtype).itemsize

    vmem_cap = _vmem_capacity_bytes()
    tm = _choose_tm(T, dim, in_bytes, vmem_cap)
    grid = (pl.cdiv(T, tm),)

    # VMEM budget: double-buffered in + out tiles + ~2 f32 temporaries + slack,
    # capped with headroom below the chip's physical VMEM.
    tile_in = tm * dim * in_bytes
    tile_out = tm * dim * 2
    need = 2 * tile_in + 2 * tile_out + 2 * tm * dim * 4 + 2 * 2**20
    vmem_limit = int(min(max(vmem_cap - 16 * 2**20, 32 * 2**20),
                         max(16 * 2**20, need)))

    cost = pl.CostEstimate(
        flops=6 * T * dim,
        transcendentals=T,
        bytes_accessed=T * dim * (in_bytes + 2) + dim * 2,
    )

    w2d = weight.reshape(1, dim)

    out = pl.pallas_call(
        functools.partial(_rmsnorm_kernel, eps=eps, inv_dim=1.0 / dim),
        out_shape=jax.ShapeDtypeStruct((T, dim), jnp.bfloat16),
        grid_spec=pltpu.PrefetchScalarGridSpec(
            num_scalar_prefetch=0,
            grid=grid,
            in_specs=[
                pl.BlockSpec((tm, dim), lambda i: (i, 0)),   # x token tile (native dtype)
                pl.BlockSpec((1, dim), lambda i: (0, 0)),    # weight (resident)
            ],
            out_specs=pl.BlockSpec((tm, dim), lambda i: (i, 0)),
        ),
        compiler_params=pltpu.CompilerParams(
            dimension_semantics=("parallel",),
            vmem_limit_bytes=vmem_limit),
        cost_estimate=cost,
    )(xt, w2d)

    return out.reshape(orig_shape)


def _reference(x, weight, eps=1e-6):
    # Mirrors the PyTorch module: bf16 input, f32 norm math, bf16 output * bf16 weight.
    xb = x.astype(jnp.bfloat16)
    xf = xb.astype(jnp.float32)
    inv = jax.lax.rsqrt(jnp.mean(xf * xf, axis=-1, keepdims=True) + eps)
    normed = (xf * inv).astype(jnp.bfloat16)
    return normed * weight.astype(jnp.bfloat16)


if __name__ == "__main__":
    key = jax.random.PRNGKey(0)
    kx, kw, kx2 = jax.random.split(key, 3)

    # Small shapes consistent with the module: batch=2, seq=8, dim=128.
    batch, seq, dim = 2, 8, 128
    x = jax.random.normal(kx, (batch, seq, dim), dtype=jnp.float32)
    weight = (1.0 + 0.1 * jax.random.normal(kw, (dim,), dtype=jnp.float32)
              ).astype(jnp.bfloat16)

    y = rms_norm(x, weight)
    jax.block_until_ready(y)
    y_ref = _reference(x, weight)
    assert y.shape == (batch, seq, dim) and y.dtype == jnp.bfloat16
    assert jnp.allclose(y.astype(jnp.float32), y_ref.astype(jnp.float32),
                        atol=2e-2, rtol=2e-2)

    # Ragged token count -> exercises the partial (masked) last block.
    x2 = jax.random.normal(kx2, (3, 7, dim), dtype=jnp.float32)
    y2 = rms_norm(x2, weight)
    jax.block_until_ready(y2)
    y2_ref = _reference(x2, weight)
    assert y2.shape == (3, 7, dim) and y2.dtype == jnp.bfloat16
    assert jnp.allclose(y2.astype(jnp.float32), y2_ref.astype(jnp.float32),
                        atol=2e-2, rtol=2e-2)

    print("KERNEL_OK")
</pallas_src>

<mosaic_0001>
module attributes {stable_mosaic.version = 11 : i64} {
  func.func @_rmsnorm_kernel(%arg0: i32, %arg1: memref<8x128xf32, #tpu.memory_space<vmem>>, %arg2: memref<1x128xbf16, #tpu.memory_space<vmem>>, %arg3: memref<8x128xbf16, #tpu.memory_space<vmem>>) attributes {dimension_semantics = [#tpu.dimension_semantics<parallel>], iteration_bounds = array<i64: 2>, scalar_prefetch = 0 : i64, scratch_operands = 0 : i64, tpu.core_type = #tpu.core_type<tc>, window_params = [{transform_indices = @transform_0, window_bounds = array<i64: 8, 128>}, {pipeline_mode = #tpu.pipeline_mode<synchronous>, transform_indices = @transform_1, window_bounds = array<i64: 1, 128>}, {transform_indices = @transform_2, window_bounds = array<i64: 8, 128>}]} {
    %c0 = arith.constant 0 : index
    %c0_0 = arith.constant 0 : index
    %0 = vector.load %arg1[%c0, %c0_0] : memref<8x128xf32, #tpu.memory_space<vmem>>, vector<8x128xf32>
    %1 = arith.truncf %0 : vector<8x128xf32> to vector<8x128xbf16>
    %2 = arith.extf %1 : vector<8x128xbf16> to vector<8x128xf32>
    %3 = arith.mulf %2, %2 : vector<8x128xf32>
    %cst = arith.constant dense<0.000000e+00> : vector<8xf32>
    %4 = vector.multi_reduction <add>, %3, %cst [1] : vector<8x128xf32> to vector<8xf32>
    %5 = vector.shape_cast %4 : vector<8xf32> to vector<8x1xf32>
    %cst_1 = arith.constant 7.812500e-03 : f32
    %6 = vector.broadcast %cst_1 : f32 to vector<8x1xf32>
    %7 = arith.mulf %5, %6 : vector<8x1xf32>
    %cst_2 = arith.constant 9.99999997E-7 : f32
    %8 = vector.broadcast %cst_2 : f32 to vector<8x1xf32>
    %9 = arith.addf %7, %8 : vector<8x1xf32>
    %10 = math.rsqrt %9 : vector<8x1xf32>
    %11 = vector.broadcast %10 : vector<8x1xf32> to vector<8x128xf32>
    %12 = arith.mulf %2, %11 : vector<8x128xf32>
    %13 = arith.truncf %12 : vector<8x128xf32> to vector<8x128xbf16>
    %c0_3 = arith.constant 0 : index
    %c0_4 = arith.constant 0 : index
    %14 = vector.load %arg2[%c0_3, %c0_4] : memref<1x128xbf16, #tpu.memory_space<vmem>>, vector<1x128xbf16>
    %15 = vector.broadcast %14 : vector<1x128xbf16> to vector<8x128xbf16>
    %16 = arith.mulf %13, %15 : vector<8x128xbf16>
    %c0_5 = arith.constant 0 : index
    %c0_6 = arith.constant 0 : index
    %17 = vector.load %arg3[%c0_5, %c0_6] : memref<8x128xbf16, #tpu.memory_space<vmem>>, vector<8x128xbf16>
    tpu.vector_store %arg3[%c0_5, %c0_6], %16 {strides = array<i32>} : memref<8x128xbf16, #tpu.memory_space<vmem>>, vector<8x128xbf16>,
    return
  }
  func.func @transform_0(%arg0: i32) -> (i32, i32) {
    %c0_i32 = arith.constant 0 : i32
    %c0_i32_0 = arith.constant 0 : i32
    return %arg0, %c0_i32 : i32, i32
  }
  func.func @transform_1(%arg0: i32) -> (i32, i32) {
    %c0_i32 = arith.constant 0 : i32
    %c0_i32_0 = arith.constant 0 : i32
    %c0_i32_1 = arith.constant 0 : i32
    return %c0_i32, %c0_i32_0 : i32, i32
  }
  func.func @transform_2(%arg0: i32) -> (i32, i32) {
    %c0_i32 = arith.constant 0 : i32
    %c0_i32_0 = arith.constant 0 : i32
    return %arg0, %c0_i32 : i32, i32
  }
}

</mosaic_0001>

<bundles_post_ra>
// kernel: rms_norm.1
= control target key start
LH: loop header
LB: loop body
LE: loop exit
PB: predicated region body
PF: predicated region fallthrough
CT: control target
= control target key end

     0   :  { %7 = vsyncpa [#allocation3], 0  ;;  %s604_s0 = inlined_call_operand.hbm [shape: f32[16,128], index: 0, kind: input, shape index: {}]   ;;  %s605_s1 = inlined_call_operand.vmem [shape: bf16[1,128], index: 1, kind: input, shape index: {}]   ;;  %s606_s2 = inlined_call_operand.hbm [shape: bf16[16,128], index: 2, kind: output, shape index: {}]  }
   0x1   :  { %9 = vsyncpa [#allocation3 + $0x1], 0 }
   0x2   :  { %10 = vsyncpa [#allocation4], 0 }
   0x3   :  { %12 = vsyncpa [#allocation4 + $0x1], 0  ;;  %s439_s9 = smov 0   ;;  %s441_s10 = smov 0  }
   0x4   :  { %s443_s11 = smov 0   ;;  %s445_s12 = smov 0  }
   0x5 LB: > { %s460_s13 = sadd.s32 4294967295, %s420_s12   ;;  %s264_s14 = sadd.s32 4294967294, %s420_s12   ;;  %s420_s12 = sphi %s445_s12, %s621_s12   ;;  %s416_s11 = sphi %s443_s11, %s620_s11   ;;  %s412_s10 = sphi %s441_s10, %s619_s10   ;;  %s408_s9 = sphi %s439_s9, %s618_s9  }
   0x6   : > { %s464_s15 = sadd.s32 1, %s420_s12   ;;  %s25_s16 = sadd.s32 1, %s416_s11 }
   0x7   : > { %s22_s17 = ssub.s32 %s420_s12, %s464_s15  ;;  %p32_p0 = scmp.ne.s32.totalorder %s416_s11, %s412_s10 }
   0x8   : > { %p23_p1 = scmp.eq.s32.totalorder %s22_s17, 0  ;;  %p33_p2 = scmp.eq.s32.totalorder %s420_s12, 0 }
   0x9   : > { %p38_p3 = scmp.ne.s32.totalorder %s412_s10, %s408_s9  ;;  %p39_p4 = scmp.eq.s32.totalorder %s460_s13, 0 }
   0xa   : > { %s476_s18 = scalar_select %p23_p1, %s416_s11, %s25_s16  }
   0xb   : > { %p478_p5 = por %p33_p2, %p32_p0  ;;  %p482_p6 = por %p39_p4, %p38_p3 }
   0xc   : > { %p83_p7 = scmp.eq.s32.totalorder %s460_s13, 1  ;;  %p89_p8 = scmp.eq.s32.totalorder %s264_s14, 1 }
   0xd   : > { %p288_p10 = scmp.lt.s32.totalorder %s420_s12, 2  ;;  %s112_s23 = sand.u32 1, %s416_s11  }
   0xe   : > { %p489_p11 = por %p83_p7, %p32_p0  ;;  %p493_p12 = por %p89_p8, %p38_p3 }
   0xf   : > { %s268_s24 = sshll.u32 %s420_s12, 7  ;;  %s267_s25 = sshll.u32 %s112_s23, 3 }
  0x10   : > { %s610_s21 = scalar_select %p489_p11, 1, 0 }
  0x11   : > { %s611_s22 = scalar_select %p493_p12, 1, 0 }
  0x12   : > { %s502_s28 = scalar_lea.hbm %s604_s0, %s268_s24  ;;  %s116_s29 = scalar_lea.vmem [#allocation2], %s267_s25 }
  0x13   : > { %s123_s30 = sshll.u32 %s116_s29, 4  ;;  %p506_p13 = pnand %p288_p10, %p478_p5  ;;  %s510_s30 = int_to_ptr.vmem [resolvable:$true] %s123_s30 }
  0x14   : > { %s113_s4 = scalar_lea.sflag [#allocation3], %s112_s23  ;;  %s324_s5 = scalar_lea.hbm %s502_s28, 128 }
  0x15   : > { %p325_p2 = scmp.ne.s32.totalorder %s502_s28, %s324_s5  ;;  %p326_p3 = pneg %p506_p13 }
  0x16   : > { %s329_s8 = scalar_lea.hbm %s604_s0, 256  ;;  %p330_p5 = scmp.lt.u32.totalorder %s502_s28, %s604_s0 }
  0x17   : > { %p327_p4 = pnand %p326_p3, %p325_p2  ;;  %p331_p8 = scmp.lt.u32.totalorder %s329_s8, %s324_s5 }
  0x18   : > { %p333_p9 = scmp.lt.u32.totalorder %s324_s5, %s502_s28 }
  0x19   : > { %p328_p7 = pneg %p327_p4  ;;  %p332_p10 = por %p331_p8, %p330_p5 }
  0x1b   : > { %p334_p0 = por %p333_p9, %p332_p10 }
  0x1d   : > { %p335_p1 = pnand %p334_p0, %p328_p7 }
  0x1f   : > { %338 = shalt.err (!%p335_p1)
}
  0x20   : > { %s339_s17 = scalar_lea.vmem %s510_s30, 128  ;;  %s422_s19 = smov [#allocation2]  }
  0x21   : > { %p340_p2 = scmp.ne.s32.totalorder %s510_s30, %s339_s17  ;;  %s344_s23 = sshll.u32 %s422_s19, 4  ;;  %s345_s23 = int_to_ptr.vmem [resolvable:$false] %s344_s23 }
  0x22   : > { %s346_s24 = scalar_lea.vmem %s345_s23, 256  ;;  %p347_p11 = scmp.lt.s32.totalorder %s510_s30, %s345_s23 }
  0x23   : > { %p342_p4 = pnand %p340_p2, %p326_p3  ;;  %p348_p5 = scmp.lt.s32.totalorder %s346_s24, %s339_s17 }
  0x25   : > { %p343_p12 = pneg %p342_p4  ;;  %p349_p8 = por %p348_p5, %p347_p11 }
  0x27   : > { %p350_p9 = pnand %p349_p8, %p343_p12 }
  0x29   : > { %353 = shalt.err (!%p350_p9)
}
  0x2a   : > { %283 = dma.hbm_to_vmem [thread:$0]  (!%p506_p13), %s502_s28, 128, %s510_s30, %s113_s4  }
  0x2b   : > { %p613_p0 = scmp.lt.s32.totalorder %s420_s12, 3  ;;  %p614_p1 = scmp.ge.s32.totalorder %s420_s12, 1 }
  0x2d   : > { %p129_p3 = pnand %p614_p1, %p613_p0 }
  0x2e   : > { %s544_s25 = sand.u32 (!%p129_p3), 1, %s412_s10  }
  0x2f   : > { %132 = sbr.rel (%p129_p3) target bundleno = 239 (0xef), region = 28  ;;  %s270_s26 = sshll.u32 (!%p129_p3), %s544_s25, 3 }
  0x30   : > { %s135_s27 = scalar_lea.sflag (!%p129_p3), [#allocation3], %s544_s25  ;;  %s138_s29 = scalar_lea.vmem (!%p129_p3), [#allocation2], %s270_s26 }
  0x36   : > { %399 = dma.done.wait (%p482_p6), %s135_s27, 128  }
  0x37   : > { %401 = vsyncadd (%p482_p6), %s135_s27, 4294967168  ;;  %v159_v0 = vld [vmem:[%s138_s29] sm:$0xff]  ;;  %v174_v7 = vlaneseq  ;;  %s271_s20 = sshll.u32 %s544_s25, 2  ;;  %s273_s3 = sshll.u32 %s460_s13, 6 }
  0x38   : > { %v160_v1 = vpack.c.bf16 %v159_v0, %v159_v0  ;;  %v170_v9 = vld [vmem:[%s605_s1] sm:$0x1]  ;;  %s158_s4 = scalar_lea.vmem [#allocation5], %s271_s20  ;;  %s560_s8 = scalar_lea.hbm %s606_s2, %s273_s3 }
  0x39   : > { %v175_v8 = vshrl.u32 %v174_v7, 7  ;;  %v172_v10 = vpack.i.b16 %v170_v9, %v170_v9  ;;  %s194_s5 = sshll.u32 %s158_s4, 4  ;;  %s181_s14 = scalar_lea.sflag [#allocation4], %s544_s25  ;;  %s562_s5 = int_to_ptr.vmem [resolvable:$true] %s194_s5 }
  0x3a   : > { %v161_v2 = vunpack.c.l.bf16 %v160_v1  ;;  %s354_s16 = scalar_lea.vmem %s562_s5, 64  ;;  %p615_p11 = scmp.ne.s32.totalorder %s610_s21, 0 }
  0x3b   : > { %v176_v11 = vsub.s32 0, %v175_v8  ;;  %p355_p6 = scmp.ne.s32.totalorder %s562_s5, %s354_s16  ;;  %s423_s13 = smov [#allocation5]  }
  0x3c   : > { %v162_v3 = vmul.f32 %v161_v2, %v161_v2  ;;  %s358_s17 = sshll.u32 %s423_s13, 4  ;;  %s359_s17 = int_to_ptr.vmem [resolvable:$false] %s358_s17 }
  0x3d   : > { %v177_v14 = vrot.slane %v172_v10, %v176_v11  ;;  %p356_p12 = pnand %p355_p6, %p615_p11  ;;  %s360_s19 = scalar_lea.vmem %s359_s17, 128 }
  0x3e   : > { %163 = vadd.xlane.f32.xlu0 %v162_v3  ;;  %p361_p7 = scmp.lt.s32.totalorder %s562_s5, %s359_s17  ;;  %p362_p10 = scmp.lt.s32.totalorder %s360_s19, %s354_s16 }
  0x3f   : > { %p357_p13 = pneg %p356_p12 }
  0x40   : > { %p363_p2 = por %p362_p10, %p361_p7 }
  0x42   : > { %p364_p4 = pnand %p363_p2, %p357_p13 }
  0xcb   : > { %v164_v4 = vpop.xlane.xlu0 %163 }
  0xcc   : > { %v165_v5 = vmul.f32 0.0078125, %v164_v4 }
  0xce   : > { %v166_v6 = vadd.f32 1e-06, %v165_v5 }
  0xd0   : > { %322 = vrsqrt.f32 %v166_v6 }
  0xda   : > { %v323_v12 = vpop.eup %322 }
  0xdb   : > { %v168_v13 = vmul.f32 %v323_v12, %v161_v2 }
  0xdd   : > { %v169_v15 = vpack.c.bf16 %v168_v13, %v168_v13 }
  0xdf   : > { %v178_v16 = vmul.bf16 %v177_v14, %v169_v15 }
  0xe1   : > { %179 = vst [vmem:[%s158_s4] sm:$0xf] %v178_v16 }
  0xe2   : > { %367 = shalt.err (!%p364_p4)
}
  0xe3   : > { %s368_s23 = scalar_lea.hbm %s560_s8, 64  ;;  %s372_s26 = scalar_lea.hbm %s606_s2, 128 }
  0xe4   : > { %p369_p5 = scmp.ne.s32.totalorder %s560_s8, %s368_s23  ;;  %p373_p0 = scmp.lt.u32.totalorder %s560_s8, %s606_s2 }
  0xe5   : > { %p374_p1 = scmp.lt.u32.totalorder %s372_s26, %s368_s23  ;;  %p376_p6 = scmp.lt.u32.totalorder %s368_s23, %s560_s8 }
  0xe6   : > { %p370_p8 = pnand %p369_p5, %p615_p11 }
  0xe7   : > { %p375_p3 = por %p374_p1, %p373_p0 }
  0xe8   : > { %p371_p9 = pneg %p370_p8 }
  0xe9   : > { %p377_p12 = por %p376_p6, %p375_p3 }
  0xeb   : > { %p378_p13 = pnand %p377_p12, %p371_p9 }
  0xed   : > { %381 = shalt.err (!%p378_p13)
}
  0xee   : > { %278 = dma.vmem_to_hbm [thread:$0]  (%p615_p11), %s562_s5, 64, %s560_s8, %s181_s14  }
  0xef PF: > { %s206_s28 = sand.u32 1, %s408_s9   ;;  %p616_p7 = scmp.ne.s32.totalorder %s611_s22, 0 }
  0xf0   : > { %p617_p10 = scmp.ge.s32.totalorder %s420_s12, 2  ;;  %s207_s30 = scalar_lea.sflag [#allocation4], %s206_s28 }
  0xf2   : > { %p285_p2 = pnand %p617_p10, %p616_p7 }
  0xf4   : > { %403 = dma.done.wait (!%p285_p2), %s207_s30, 64  }
  0xf5   : > { %405 = vsyncadd (!%p285_p2), %s207_s30, 4294967232  ;;  %p15_p4 = scmp.ge.s32.totalorder %s464_s15, 4   ;;  %s618_s9 = smov %s412_s10 }
  0xf6   : > { %s619_s10 = smov %s416_s11  ;;  %s620_s11 = smov %s476_s18 }
  0xf7   : > { %s621_s12 = smov %s464_s15  ;;  %17 = sbr.rel (!%p15_p4) target bundleno = 5 (0x5), region = 73 }
  0xfe   :  { %212 = vsyncpa [#allocation3], 1 }
  0xff   :  { %214 = vsyncpa [#allocation3 + $0x1], 1 }
 0x100   :  { %215 = vsyncpa [#allocation4], 1 }
 0x101   :  { %217 = vsyncpa [#allocation4 + $0x1], 1 }

</bundles_post_ra>
